<compile_context>
chip_gen: v7x
topology: tpu7x:2x2x1
jax: 0.10.0
libtpu: 0.0.40
codegen_flags: <defaults>
</compile_context>

<pallas_src>
import functools

import jax
import jax.numpy as jnp
from jax.experimental import pallas as pl
from jax.experimental.pallas import tpu as pltpu

H_PAD = 128  # hidden width padded to one full lane group (exact, see pack_params)


def _round_up(n, m):
    return -(-n // m) * m


def _packed_layout(n_features):
    """Row offsets of each parameter inside the packed (rows, 128) blob.

    Every section starts on an 8-row (sublane) boundary so in-kernel slices are
    aligned.  Final-layer weights (H, 1) are stored transposed as a (1, H_PAD)
    row; scalar biases are stored broadcast across a (1, H_PAD) row.
    """
    sizes = (
        ("pw0", n_features), ("pb0", 1),
        ("pw1", H_PAD),      ("pb1", 1),
        ("pw2", 1),          ("pb2", 1),
        ("vw0", 2),          ("vb0", 1),
        ("vw1", H_PAD),      ("vb1", 1),
        ("vw2", 1),          ("vb2", 1),
    )
    offsets, row = {}, 0
    for name, rows in sizes:
        offsets[name] = row
        row += _round_up(rows, 8)
    return offsets, row


def pack_params(params, n_features, hidden):
    """Pack the 12 (in,out)-layout weight/bias arrays into one lane-dense blob.

    Hidden dims are zero-padded to H_PAD=128: padded units have zero incoming
    and outgoing weights and zero bias, so ReLU keeps them at exactly 0 and the
    result is bit-identical to the unpadded network.  Done once outside the
    per-step forward so the kernels keep exactly two input DMAs.
    """
    assert hidden <= H_PAD, "TODO(synk): hidden > 128 needs a K-chunked matmul"
    (pw0, pb0, pw1, pb1, pw2, pb2,
     vw0, vb0, vw1, vb1, vw2, vb2) = params
    offsets, total_rows = _packed_layout(n_features)
    pieces = (
        ("pw0", pw0),                                           # (F, H)
        ("pb0", pb0.reshape(1, -1)),
        ("pw1", pw1),                                           # (H, H)
        ("pb1", pb1.reshape(1, -1)),
        ("pw2", pw2.reshape(1, -1)),                            # (H, 1) -> row
        ("pb2", jnp.broadcast_to(pb2.reshape(1, 1), (1, H_PAD))),
        ("vw0", vw0),                                           # (2, H)
        ("vb0", vb0.reshape(1, -1)),
        ("vw1", vw1),                                           # (H, H)
        ("vb1", vb1.reshape(1, -1)),
        ("vw2", vw2.reshape(1, -1)),                            # (H, 1) -> row
        ("vb2", jnp.broadcast_to(vb2.reshape(1, 1), (1, H_PAD))),
    )
    packed = jnp.zeros((total_rows, H_PAD), jnp.float32)
    for name, arr in pieces:
        r = offsets[name]
        packed = packed.at[r:r + arr.shape[0], :arr.shape[1]].set(
            arr.astype(jnp.float32))
    return packed


def _make_policy_kernel(n_features, offs):
    F = n_features

    def kernel(x_ref, prm_ref, logits_ref):
        x = x_ref[...]                                          # (tm, F)

        # -------- policy MLP: F -> 128 -> 128 -> 1 (ReLU), weights resident ---
        w0 = prm_ref[offs["pw0"]:offs["pw0"] + F, :]            # (F, 128)
        b0 = prm_ref[offs["pb0"]:offs["pb0"] + 1, :]            # (1, 128)
        h = jnp.maximum(
            jnp.dot(x, w0, preferred_element_type=jnp.float32) + b0, 0.0)
        w1 = prm_ref[offs["pw1"]:offs["pw1"] + H_PAD, :]        # (128, 128)
        b1 = prm_ref[offs["pb1"]:offs["pb1"] + 1, :]            # (1, 128)
        h = jnp.maximum(
            jnp.dot(h, w1, preferred_element_type=jnp.float32) + b1, 0.0)

        # Lane-dense final layer: (1,128) @ (128,tm) -> (1,tm) row with M on
        # lanes (unmasked full-lane stores); h.T rides the otherwise idle XLU.
        w2 = prm_ref[offs["pw2"]:offs["pw2"] + 1, :]            # (1, 128)
        b2 = prm_ref[offs["pb2"]:offs["pb2"] + 1, 0:1]          # (1, 1)
        logits_ref[...] = (
            jnp.dot(w2, h.T, preferred_element_type=jnp.float32) + b2)

    return kernel


def _make_value_kernel(offs):
    def kernel(tT_ref, prm_ref, values_ref):
        tT = tT_ref[...]                                        # (B, 2)
        # K=2 first layer on the VPU (an MXU push here is pure latency).
        w0 = prm_ref[offs["vw0"]:offs["vw0"] + 2, :]            # (2, 128)
        b0 = prm_ref[offs["vb0"]:offs["vb0"] + 1, :]            # (1, 128)
        hv = jnp.maximum(
            tT[:, 0:1] * w0[0:1, :] + tT[:, 1:2] * w0[1:2, :] + b0, 0.0)
        w1 = prm_ref[offs["vw1"]:offs["vw1"] + H_PAD, :]        # (128, 128)
        b1 = prm_ref[offs["vb1"]:offs["vb1"] + 1, :]
        hv = jnp.maximum(
            jnp.dot(hv, w1, preferred_element_type=jnp.float32) + b1, 0.0)
        w2 = prm_ref[offs["vw2"]:offs["vw2"] + 1, :]            # (1, 128)
        b2 = prm_ref[offs["vb2"]:offs["vb2"] + 1, 0:1]          # (1, 1)
        values_ref[...] = jnp.sum(hv * w2, axis=-1, keepdims=True) + b2  # (B,1)

    return kernel


def neural_af_forward(states, packed_params, *, t_idx, T_idx, tm=1024):
    """Returns (logits (B, P), values (B,)) — mirrors iclr2020_NeuralAF.forward."""
    B, P, F = states.shape
    M = B * P
    offs, total_rows = _packed_layout(F)
    assert packed_params.shape == (total_rows, H_PAD)

    # Flatten to (M, F) in the wrapper (free contiguous reshape) and gather the
    # tiny (B, 2) tT slab with static slices (< 1 KiB extra DMA).
    x = states.reshape(M, F)
    tT = jnp.concatenate(
        [states[:, 0, t_idx:t_idx + 1], states[:, 0, T_idx:T_idx + 1]], axis=-1)

    # M-tile selection: one exact tile for small M; else multiples of 128 rows
    # (sublane-aligned, ~48 KiB/tile double-buffered at the default tm=1024).
    if M <= tm:
        tm = M
    else:
        tm = _round_up(tm, 128)
    grid = pl.cdiv(M, tm)
    m_pad = grid * tm

    logits_row = pl.pallas_call(
        _make_policy_kernel(F, offs),
        out_shape=jax.ShapeDtypeStruct((1, m_pad), jnp.float32),
        grid=(grid,),
        in_specs=[
            # streamed, auto double-buffered M-tiles
            pl.BlockSpec((tm, F), lambda i: (i, 0)),
            # constant-index -> packed weights stay VMEM-resident across grid
            pl.BlockSpec((total_rows, H_PAD), lambda i: (0, 0)),
        ],
        # lane-dense logits: each grid step writes lanes [i*tm, (i+1)*tm)
        out_specs=pl.BlockSpec((1, tm), lambda i: (0, i)),
        compiler_params=pltpu.CompilerParams(
            dimension_semantics=("parallel",),       # shard grid over v7x's 2 TCs
            vmem_limit_bytes=32 * 1024 * 1024,
        ),
    )(x, packed_params)

    # Value MLP runs exactly once in its own micro-kernel (not per M-tile).
    vmem = pl.BlockSpec(memory_space=pltpu.MemorySpace.VMEM)
    values_col = pl.pallas_call(
        _make_value_kernel(offs),
        out_shape=jax.ShapeDtypeStruct((B, 1), jnp.float32),
        in_specs=[vmem, vmem],
        out_specs=vmem,
    )(tT, packed_params)

    logits = logits_row[0, :M].reshape(B, P)   # free contiguous slice + reshape
    return logits, values_col[:, 0]


def init_params(key, n_features, hidden, value_in=2):
    """Weights ~ N(0, 0.01) stored as (in, out); biases zero (NeuralAF.init_weights)."""
    ks = jax.random.split(key, 6)

    def w(k, din, dout):
        return (0.01 * jax.random.normal(k, (din, dout))).astype(jnp.float32)

    def b(dout):
        return jnp.zeros((1, dout), jnp.float32)

    pw0, pb0 = w(ks[0], n_features, hidden), b(hidden)
    pw1, pb1 = w(ks[1], hidden, hidden), b(hidden)
    pw2, pb2 = w(ks[2], hidden, 1), b(1)
    vw0, vb0 = w(ks[3], value_in, hidden), b(hidden)
    vw1, vb1 = w(ks[4], hidden, hidden), b(hidden)
    vw2, vb2 = w(ks[5], hidden, 1), b(1)
    return (pw0, pb0, pw1, pb1, pw2, pb2, vw0, vb0, vw1, vb1, vw2, vb2)


def ref_forward(states, params, t_idx, T_idx):
    """Pure-JAX reference mirroring iclr2020_NeuralAF.forward exactly."""
    (pw0, pb0, pw1, pb1, pw2, pb2,
     vw0, vb0, vw1, vb1, vw2, vb2) = params
    h = jnp.maximum(states @ pw0 + pb0, 0.0)
    h = jnp.maximum(h @ pw1 + pb1, 0.0)
    logits = (h @ pw2 + pb2)[..., 0]                    # == logits.squeeze_(2)
    tT = states[:, 0, jnp.array([t_idx, T_idx])]        # == states[:, [0], [t_idx, T_idx]]
    hv = jnp.maximum(tT @ vw0 + vb0, 0.0)
    hv = jnp.maximum(hv @ vw1 + vb1, 0.0)
    values = (hv @ vw2 + vb2)[:, 0]                     # == values.squeeze_(1)
    return logits, values


if __name__ == "__main__":
    B, P, F, H = 2, 8, 6, 32
    t_idx, T_idx = 4, 5

    key = jax.random.PRNGKey(0)
    k_states, k_params = jax.random.split(key)
    states = jax.random.normal(k_states, (B, P, F), dtype=jnp.float32)
    params = init_params(k_params, F, H)
    packed = pack_params(params, F, H)   # one-time packing; blob stays resident

    fwd = jax.jit(functools.partial(neural_af_forward, t_idx=t_idx, T_idx=T_idx))
    logits, values = fwd(states, packed)
    jax.block_until_ready((logits, values))

    ref_logits, ref_values = ref_forward(states, params, t_idx, T_idx)
    assert logits.shape == (B, P) and values.shape == (B,)
    assert jnp.allclose(logits, ref_logits, atol=1e-5, rtol=1e-5)
    assert jnp.allclose(values, ref_values, atol=1e-5, rtol=1e-5)

    print("KERNEL_OK")
</pallas_src>

<mosaic_0001>
module attributes {stable_mosaic.version = 11 : i64} {
  func.func @kernel(%arg0: i32, %arg1: memref<16x6xf32, #tpu.memory_space<vmem>>, %arg2: memref<336x128xf32, #tpu.memory_space<vmem>>, %arg3: memref<1x16xf32, #tpu.memory_space<vmem>>) attributes {dimension_semantics = [#tpu.dimension_semantics<parallel>], iteration_bounds = array<i64: 1>, scalar_prefetch = 0 : i64, scratch_operands = 0 : i64, tpu.core_type = #tpu.core_type<tc>, window_params = [{transform_indices = @transform_0, window_bounds = array<i64: 16, 6>}, {pipeline_mode = #tpu.pipeline_mode<synchronous>, transform_indices = @transform_1, window_bounds = array<i64: 336, 128>}, {transform_indices = @transform_2, window_bounds = array<i64: 1, 16>}]} {
    %c0 = arith.constant 0 : index
    %c0_0 = arith.constant 0 : index
    %0 = vector.load %arg1[%c0, %c0_0] : memref<16x6xf32, #tpu.memory_space<vmem>>, vector<16x6xf32>
    %c0_1 = arith.constant 0 : index
    %c0_2 = arith.constant 0 : index
    %1 = vector.load %arg2[%c0_1, %c0_2] : memref<336x128xf32, #tpu.memory_space<vmem>>, vector<6x128xf32>
    %c8 = arith.constant 8 : index
    %c0_3 = arith.constant 0 : index
    %2 = vector.load %arg2[%c8, %c0_3] : memref<336x128xf32, #tpu.memory_space<vmem>>, vector<1x128xf32>
    %cst = arith.constant dense<0.000000e+00> : vector<16x128xf32>
    %3 = tpu.matmul %0, %1, %cst {dimension_numbers = #tpu.dot_dimension_numbers<[1], [0], [0], [1], [0, 0, 1, 1], [], []>} : vector<16x6xf32>, vector<6x128xf32>, vector<16x128xf32> -> vector<16x128xf32>
    %4 = vector.broadcast %2 : vector<1x128xf32> to vector<16x128xf32>
    %5 = arith.addf %3, %4 : vector<16x128xf32>
    %cst_4 = arith.constant 0.000000e+00 : f32
    %6 = vector.broadcast %cst_4 : f32 to vector<16x128xf32>
    %7 = arith.maximumf %5, %6 : vector<16x128xf32>
    %c16 = arith.constant 16 : index
    %c0_5 = arith.constant 0 : index
    %8 = vector.load %arg2[%c16, %c0_5] : memref<336x128xf32, #tpu.memory_space<vmem>>, vector<128x128xf32>
    %c144 = arith.constant 144 : index
    %c0_6 = arith.constant 0 : index
    %9 = vector.load %arg2[%c144, %c0_6] : memref<336x128xf32, #tpu.memory_space<vmem>>, vector<1x128xf32>
    %cst_7 = arith.constant dense<0.000000e+00> : vector<16x128xf32>
    %10 = tpu.matmul %7, %8, %cst_7 {dimension_numbers = #tpu.dot_dimension_numbers<[1], [0], [0], [1], [0, 0, 1, 1], [], []>} : vector<16x128xf32>, vector<128x128xf32>, vector<16x128xf32> -> vector<16x128xf32>
    %11 = vector.broadcast %9 : vector<1x128xf32> to vector<16x128xf32>
    %12 = arith.addf %10, %11 : vector<16x128xf32>
    %cst_8 = arith.constant 0.000000e+00 : f32
    %13 = vector.broadcast %cst_8 : f32 to vector<16x128xf32>
    %14 = arith.maximumf %12, %13 : vector<16x128xf32>
    %c152 = arith.constant 152 : index
    %c0_9 = arith.constant 0 : index
    %15 = vector.load %arg2[%c152, %c0_9] : memref<336x128xf32, #tpu.memory_space<vmem>>, vector<1x128xf32>
    %c160 = arith.constant 160 : index
    %c0_10 = arith.constant 0 : index
    %16 = vector.load %arg2[%c160, %c0_10] : memref<336x128xf32, #tpu.memory_space<vmem>>, vector<1x1xf32>
    %17 = tpu.transpose %14, [1, 0] : vector<16x128xf32> -> vector<128x16xf32>
    %cst_11 = arith.constant dense<0.000000e+00> : vector<1x16xf32>
    %18 = tpu.matmul %15, %17, %cst_11 {dimension_numbers = #tpu.dot_dimension_numbers<[1], [0], [0], [1], [0, 0, 1, 1], [], []>} : vector<1x128xf32>, vector<128x16xf32>, vector<1x16xf32> -> vector<1x16xf32>
    %19 = vector.broadcast %16 : vector<1x1xf32> to vector<1x16xf32>
    %20 = arith.addf %18, %19 : vector<1x16xf32>
    %c0_12 = arith.constant 0 : index
    %c0_13 = arith.constant 0 : index
    %21 = vector.load %arg3[%c0_12, %c0_13] : memref<1x16xf32, #tpu.memory_space<vmem>>, vector<1x16xf32>
    tpu.vector_store %arg3[%c0_12, %c0_13], %20 {strides = array<i32>} : memref<1x16xf32, #tpu.memory_space<vmem>>, vector<1x16xf32>,
    return
  }
  func.func @transform_0(%arg0: i32) -> (i32, i32) {
    %c0_i32 = arith.constant 0 : i32
    %c0_i32_0 = arith.constant 0 : i32
    return %arg0, %c0_i32 : i32, i32
  }
  func.func @transform_1(%arg0: i32) -> (i32, i32) {
    %c0_i32 = arith.constant 0 : i32
    %c0_i32_0 = arith.constant 0 : i32
    %c0_i32_1 = arith.constant 0 : i32
    return %c0_i32, %c0_i32_0 : i32, i32
  }
  func.func @transform_2(%arg0: i32) -> (i32, i32) {
    %c0_i32 = arith.constant 0 : i32
    %c0_i32_0 = arith.constant 0 : i32
    return %c0_i32, %arg0 : i32, i32
  }
}

module attributes {stable_mosaic.version = 11 : i64} {
  func.func @kernel(%arg0: memref<2x2xf32, #tpu.memory_space<vmem>>, %arg1: memref<336x128xf32, #tpu.memory_space<vmem>>, %arg2: memref<2x1xf32, #tpu.memory_space<vmem>>) attributes {dimension_semantics = [], scalar_prefetch = 0 : i64, scratch_operands = 0 : i64, tpu.core_type = #tpu.core_type<tc>} {
    %c0 = arith.constant 0 : index
    %c0_0 = arith.constant 0 : index
    %0 = vector.load %arg0[%c0, %c0_0] : memref<2x2xf32, #tpu.memory_space<vmem>>, vector<2x2xf32>
    %c168 = arith.constant 168 : index
    %c0_1 = arith.constant 0 : index
    %1 = vector.load %arg1[%c168, %c0_1] : memref<336x128xf32, #tpu.memory_space<vmem>>, vector<2x128xf32>
    %c176 = arith.constant 176 : index
    %c0_2 = arith.constant 0 : index
    %2 = vector.load %arg1[%c176, %c0_2] : memref<336x128xf32, #tpu.memory_space<vmem>>, vector<1x128xf32>
    %3 = vector.extract_strided_slice %0 {offsets = [0, 0], sizes = [2, 1], strides = [1, 1]} : vector<2x2xf32> to vector<2x1xf32>
    %4 = vector.extract_strided_slice %1 {offsets = [0, 0], sizes = [1, 128], strides = [1, 1]} : vector<2x128xf32> to vector<1x128xf32>
    %5 = vector.broadcast %3 : vector<2x1xf32> to vector<2x128xf32>
    %6 = vector.broadcast %4 : vector<1x128xf32> to vector<2x128xf32>
    %7 = arith.mulf %5, %6 : vector<2x128xf32>
    %8 = vector.extract_strided_slice %0 {offsets = [0, 1], sizes = [2, 1], strides = [1, 1]} : vector<2x2xf32> to vector<2x1xf32>
    %9 = vector.extract_strided_slice %1 {offsets = [1, 0], sizes = [1, 128], strides = [1, 1]} : vector<2x128xf32> to vector<1x128xf32>
    %10 = vector.broadcast %8 : vector<2x1xf32> to vector<2x128xf32>
    %11 = vector.broadcast %9 : vector<1x128xf32> to vector<2x128xf32>
    %12 = arith.mulf %10, %11 : vector<2x128xf32>
    %13 = arith.addf %7, %12 : vector<2x128xf32>
    %14 = vector.broadcast %2 : vector<1x128xf32> to vector<2x128xf32>
    %15 = arith.addf %13, %14 : vector<2x128xf32>
    %cst = arith.constant 0.000000e+00 : f32
    %16 = vector.broadcast %cst : f32 to vector<2x128xf32>
    %17 = arith.maximumf %15, %16 : vector<2x128xf32>
    %c184 = arith.constant 184 : index
    %c0_3 = arith.constant 0 : index
    %18 = vector.load %arg1[%c184, %c0_3] : memref<336x128xf32, #tpu.memory_space<vmem>>, vector<128x128xf32>
    %c312 = arith.constant 312 : index
    %c0_4 = arith.constant 0 : index
    %19 = vector.load %arg1[%c312, %c0_4] : memref<336x128xf32, #tpu.memory_space<vmem>>, vector<1x128xf32>
    %cst_5 = arith.constant dense<0.000000e+00> : vector<2x128xf32>
    %20 = tpu.matmul %17, %18, %cst_5 {dimension_numbers = #tpu.dot_dimension_numbers<[1], [0], [0], [1], [0, 0, 1, 1], [], []>} : vector<2x128xf32>, vector<128x128xf32>, vector<2x128xf32> -> vector<2x128xf32>
    %21 = vector.broadcast %19 : vector<1x128xf32> to vector<2x128xf32>
    %22 = arith.addf %20, %21 : vector<2x128xf32>
    %cst_6 = arith.constant 0.000000e+00 : f32
    %23 = vector.broadcast %cst_6 : f32 to vector<2x128xf32>
    %24 = arith.maximumf %22, %23 : vector<2x128xf32>
    %c320 = arith.constant 320 : index
    %c0_7 = arith.constant 0 : index
    %25 = vector.load %arg1[%c320, %c0_7] : memref<336x128xf32, #tpu.memory_space<vmem>>, vector<1x128xf32>
    %c328 = arith.constant 328 : index
    %c0_8 = arith.constant 0 : index
    %26 = vector.load %arg1[%c328, %c0_8] : memref<336x128xf32, #tpu.memory_space<vmem>>, vector<1x1xf32>
    %27 = vector.broadcast %25 : vector<1x128xf32> to vector<2x128xf32>
    %28 = arith.mulf %24, %27 : vector<2x128xf32>
    %cst_9 = arith.constant dense<0.000000e+00> : vector<2xf32>
    %29 = vector.multi_reduction <add>, %28, %cst_9 [1] : vector<2x128xf32> to vector<2xf32>
    %30 = vector.shape_cast %29 : vector<2xf32> to vector<2x1xf32>
    %31 = vector.broadcast %26 : vector<1x1xf32> to vector<2x1xf32>
    %32 = arith.addf %30, %31 : vector<2x1xf32>
    %c0_10 = arith.constant 0 : index
    %c0_11 = arith.constant 0 : index
    %33 = vector.load %arg2[%c0_10, %c0_11] : memref<2x1xf32, #tpu.memory_space<vmem>>, vector<2x1xf32>
    tpu.vector_store %arg2[%c0_10, %c0_11], %32 {strides = array<i32>} : memref<2x1xf32, #tpu.memory_space<vmem>>, vector<2x1xf32>,
    return
  }
}

</mosaic_0001>

<bundles_post_ra>
// kernel: squeeze.6
= control target key start
LH: loop header
LB: loop body
LE: loop exit
PB: predicated region body
PF: predicated region fallthrough
CT: control target
= control target key end

     0   :  { %s85_s0 = inlined_call_operand.vmem [shape: f32[16], index: 0, kind: input, shape index: {}]   ;;  %s86_s1 = inlined_call_operand.hbm [shape: f32[2,8], index: 1, kind: output, shape index: {}]  }
   0x1   :  { %v5_v0 = vld [vmem:[%s85_s0] sm:$0x1] }
   0x2   :  { %2 = vsyncpa [#allocation1], 0  ;;  %6 = vst [vmem:[#allocation3] sm:$0x1] %v5_v0  ;;  %vm8_vm0 = vcmask 64512   ;;  %s58_s0 = smov 120  }
   0x3   :  { %s59_s8 = smov [#allocation0]  }
   0x4   :  { %s26_s9 = sshll.u32 %s59_s8, 4  ;;  %s27_s9 = int_to_ptr.vmem [resolvable:$true] %s26_s9 }
   0x5   :  { %s34_s10 = scalar_lea.vmem %s27_s9, 32  ;;  %p39_p1 = scmp.lt.s32.totalorder %s27_s9, %s27_s9 }
   0x6   :  { %p35_p0 = scmp.ne.s32.totalorder %s27_s9, %s34_s10  ;;  %p40_p2 = scmp.lt.s32.totalorder %s34_s10, %s34_s10 }
   0x8   :  { %p41_p3 = por %p40_p2, %p39_p1 }
   0x9   :  { %v10_v1 = vld [vmem:[#allocation3] sm:$0x1]  }
   0xa   :  { %v7_v2 = vld [vmem:[#allocation3] sm:$0x1]   ;;  %11 = vrot.lane.b32.xlu0 %v10_v1, %s58_s0  ;;  %p42_p4 = pnand %p41_p3, %p35_p0 }
   0xb   :  { %9 = vst.msk [vmem:[#allocation2] sm:$0x1] %vm8_vm0, %v7_v2  }
  0x7c   :  { %v12_v3 = vpop.permute.xlu0 %11  }
  0x7d   :  { %15 = vst.msk [vmem:[#allocation2 + $0x1] sm:$0x1] %vm8_vm0, %v12_v3  }
  0x84   :  { %v19_v4 = vld [vmem:[#allocation2] sm:$0x3] }
  0x85   :  { %21 = vst [vmem:[#allocation0] sm:$0x3] %v19_v4 }
  0x86   :  { %45 = shalt.err (!%p42_p4)
}
  0x87   :  { %s46_s13 = scalar_lea.hbm %s86_s1, 32 }
  0x88   :  { %p47_p5 = scmp.ne.s32.totalorder %s86_s1, %s46_s13  ;;  %p50_p6 = scmp.lt.u32.totalorder %s46_s13, %s86_s1 }
  0x8a   :  { %p52_p7 = pnand %p50_p6, %p47_p5 }
  0x8c   :  { %55 = shalt.err (!%p52_p7)
}
  0x8d   :  { %29 = dma.vmem_to_hbm [thread:$0]  %s27_s9, 32, %s86_s1, [#allocation1]  }
  0x8e   :  { %56 = dma.done.wait [#allocation1], 32  }
  0x8f   :  { %57 = vsyncadd [#allocation1], 4294967264 }
  0x90   :  { %31 = vsyncpa [#allocation1], 1 }

// kernel: neural_af_forward.2
= control target key start
LH: loop header
LB: loop body
LE: loop exit
PB: predicated region body
PF: predicated region fallthrough
CT: control target
= control target key end

     0   :  { %7 = vsyncpa [#allocation3], 0  ;;  %s446_s9 = smov [#allocation2]   ;;  %s489_s0 = inlined_call_operand.vmem [shape: f32[16,6], index: 0, kind: input, shape index: {}]   ;;  %s490_s1 = inlined_call_operand.hbm [shape: f32[336,128], index: 1, kind: input, shape index: {}]   ;;  %s491_s2 = inlined_call_operand.vmem [shape: f32[1,16], index: 2, kind: output, shape index: {}]  }
   0x1   :  { %s15_s10 = sshll.u32 %s446_s9, 4  ;;  %s422_s13 = scalar_lea.hbm %s490_s1, 5376  ;;  %s16_s10 = int_to_ptr.vmem [resolvable:$true] %s15_s10 }
   0x2   :  { %p423_p0 = scmp.ne.s32.totalorder %s490_s1, %s422_s13  ;;  %p426_p1 = scmp.lt.u32.totalorder %s422_s13, %s490_s1 }
   0x4   :  { %p428_p2 = pnand %p426_p1, %p423_p0 }
   0x6   :  { %431 = shalt.err (!%p428_p2)
}
   0x7   :  { %s432_s18 = scalar_lea.vmem %s16_s10, 5376  ;;  %p437_p4 = scmp.lt.s32.totalorder %s16_s10, %s16_s10 }
   0x8   :  { %p433_p3 = scmp.ne.s32.totalorder %s16_s10, %s432_s18  ;;  %p438_p5 = scmp.lt.s32.totalorder %s432_s18, %s432_s18 }
   0xa   :  { %p439_p6 = por %p438_p5, %p437_p4 }
   0xc   :  { %p440_p7 = pnand %p439_p6, %p433_p3 }
   0xe   :  { %443 = shalt.err (!%p440_p7)
}
   0xf   :  { %s447_s19 = smov 128   ;;  %s448_s20 = smov 8  }
  0x10   :  { %21 = dma.hbm_to_vmem [thread:$0]  %s490_s1, 5376, %s16_s10, [#allocation3], %s447_s19, %s447_s19, %s448_s20  }
  0x11   :  { %444 = dma.done.wait [#allocation3], 5376  }
  0x12   :  { %445 = vsyncadd [#allocation3], 4294961920  ;;  %vm40_vm0 = vcmask 1045504   ;;  %vm33_vm1 = vcmask 48128   ;;  %v27_v0 = vld [vmem:[#allocation2] sm:$0x3f] }
  0x13   :  { %v25_v1 = vld [vmem:[%s489_s0] sm:$0xff]  ;;  %v26_v2 = vld [vmem:[%s489_s0 + $0x8] sm:$0xff]  ;;  %332 = vmatprep.subr.msk.mxu0 %vm40_vm0, %v27_v0  ;;  %v121_v3 = vld [vmem:[#allocation2 + $0x10] sm:$0xff]  ;;  %v449_v34 = vmov 0.0|0.0   ;;  %vm450_vm2 = vmmov 0   ;;  %v451_v35 = vmov 0.0  }
  0x14   :  { %334 = vmatprep.mubr.msk.f32.mxu0 %vm33_vm1, %v25_v1  ;;  %v122_v4 = vld [vmem:[#allocation2 + $0x18] sm:$0xff]  ;;  %v123_v5 = vld [vmem:[#allocation2 + $0x20] sm:$0xff]  ;;  %333 = vmatpush3.msk.msra.mxu0 %vm40_vm0, %v27_v0  ;;  %v124_v7 = vld [vmem:[#allocation2 + $0x28] sm:$0xff]  ;;  %v452_v37 = vmov 0   ;;  %vm296_vm3 = vcmask 122880  }
  0x15   :  { %v379_v6 = vpack.c.bf16 %v122_v4, %v121_v3  ;;  %335 = vmatmul.mubr.msk.f32.vlgmr.msra.gmra.mrb[0].mxu0 %vm33_vm1, %v26_v2  ;;  %v383_v8 = vpack.c.bf16 %v124_v7, %v123_v5  ;;  %v125_v9 = vld [vmem:[#allocation2 + $0x30] sm:$0xff]  ;;  %v126_v10 = vld [vmem:[#allocation2 + $0x38] sm:$0xff]  ;;  %v127_v12 = vld [vmem:[#allocation2 + $0x40] sm:$0xff]  ;;  %411 = vmatprep.subr.bf16.mxu0 %v449_v34 }
  0x16   :  { %v387_v11 = vpack.c.bf16 %v126_v10, %v125_v9  ;;  %v128_v13 = vld [vmem:[#allocation2 + $0x48] sm:$0xff]  ;;  %v129_v15 = vld [vmem:[#allocation2 + $0x50] sm:$0xff]  ;;  %v130_v16 = vld [vmem:[#allocation2 + $0x58] sm:$0xff]  ;;  %376 = vmatprep.mubr.msk.f32.mxu0 %vm450_vm2, %v451_v35  ;;  %421 = vset.pattern.permute.xlu0 %v452_v37 }
  0x17   :  { %380 = vmatprep.subr.bf16.mxu1 %v379_v6  ;;  %v391_v14 = vpack.c.bf16 %v128_v13, %v127_v12  ;;  %v395_v17 = vpack.c.bf16 %v130_v16, %v129_v15  ;;  %v131_v18 = vld [vmem:[#allocation2 + $0x60] sm:$0xff]  ;;  %v132_v19 = vld [vmem:[#allocation2 + $0x68] sm:$0xff]  ;;  %v133_v21 = vld [vmem:[#allocation2 + $0x70] sm:$0xff] }
  0x18   :  { %382 = vmatpush3.bf16.msra.mxu1 %v379_v6  ;;  %v399_v20 = vpack.c.bf16 %v132_v19, %v131_v18  ;;  %v134_v22 = vld [vmem:[#allocation2 + $0x78] sm:$0xff]  ;;  %v135_v24 = vld [vmem:[#allocation2 + $0x80] sm:$0xff]  ;;  %v136_v25 = vld [vmem:[#allocation2 + $0x88] sm:$0xff] }
  0x19   :  { %384 = vmatprep.subr.bf16.mxu1 %v383_v8  ;;  %v403_v23 = vpack.c.bf16 %v134_v22, %v133_v21  ;;  %v407_v26 = vpack.c.bf16 %v136_v25, %v135_v24  ;;  %v303_v27 = vld [vmem:[#allocation2 + $0x8] ss:$0 sm:$0xff]  ;;  %v220_v36 = vld [vmem:[#allocation2 + $0xa0] sm:$0x1]  ;;  %v307_v38 = vld [vmem:[#allocation2 + $0x90] ss:$0 sm:$0xff] }
  0x1a   :  { %223 = vperm.xlu0 %421, %v220_v36   ;;  %v219_v46 = vld [vmem:[#allocation2 + $0x98] sm:$0x1] }
  0x1c   :  { %386 = vmatpush3.bf16.msra.mxu1 %v383_v8 }
  0x1d   :  { %388 = vmatprep.subr.bf16.mxu1 %v387_v11 }
  0x20   :  { %390 = vmatpush3.bf16.msra.mxu1 %v387_v11 }
  0x21   :  { %392 = vmatprep.subr.bf16.mxu1 %v391_v14 }
  0x24   :  { %394 = vmatpush3.bf16.msra.mxu1 %v391_v14 }
  0x25   :  { %396 = vmatprep.subr.bf16.mxu1 %v395_v17 }
  0x28   :  { %398 = vmatpush3.bf16.msra.mxu1 %v395_v17 }
  0x29   :  { %400 = vmatprep.subr.bf16.mxu1 %v399_v20 }
  0x2c   :  { %402 = vmatpush3.bf16.msra.mxu1 %v399_v20 }
  0x2d   :  { %404 = vmatprep.subr.bf16.mxu1 %v403_v23 }
  0x30   :  { %406 = vmatpush3.bf16.msra.mxu1 %v403_v23 }
  0x31   :  { %408 = vmatprep.subr.bf16.mxu1 %v407_v26 }
  0x34   :  { %410 = vmatpush3.bf16.msra.mxu1 %v407_v26 }
  0x99   :  { %v224_v47 = vpop.permute.xlu0 %223 }
  0xe8   :  { %v336_v28 = vpop.f32.mrb[0].mxu0 }
  0xe9   :  { %v116_v29 = vadd.f32 %v336_v28, %v303_v27  ;;  %v110_v30 = vpop.f32.mrb[1].mxu0 }
  0xea   :  { %v111_v31 = vadd.f32 %v303_v27, %v110_v30 }
  0xeb   :  { %v120_v33 = vmax.f32 %v116_v29, 0.0 }
  0xec   :  { %v119_v32 = vmax.f32 %v111_v31, 0.0 }
  0xee   :  { %369 = vmatprep.mubr.f32.mxu1 %v119_v32 }
  0xef   :  { %370 = vmatmul.mubr.f32.vlgmr.msra.gmra.mrb[0].mxu1 %v120_v33 }
 0x1c2   :  { %v371_v39 = vpop.f32.mrb[0].mxu1 }
 0x1c3   :  { %v214_v40 = vadd.f32 %v371_v39, %v307_v38  ;;  %v208_v41 = vpop.f32.mrb[1].mxu1 }
 0x1c4   :  { %v209_v42 = vadd.f32 %v307_v38, %v208_v41 }
 0x1c5   :  { %v218_v43 = vmax.f32 %v214_v40, 0.0 }
 0x1c6   :  { %v217_v44 = vmax.f32 %v209_v42, 0.0 }
 0x1c8   :  { %v412_v45 = vpack.c.bf16 %v218_v43, %v217_v44 }
 0x1ca   :  { %413 = vmatpush3.bf16.xpose.msra.mxu0 %v412_v45 }
 0x1d1   :  { %377 = vmatmul.mubr.f32.vlgmr.msra.gmra.mrb[2].mxu0 %v219_v46 }
 0x2a4   :  { %v292_v48 = vpop.f32.mrb[2].mxu0 }
 0x2a5   :  { %v293_v49 = vadd.f32 %v292_v48, %v224_v47  ;;  %v378_v50 = vpop.f32.mrb[3].mxu0 }
 0x2a7   :  { %297 = vst.msk [vmem:[%s491_s2] sm:$0x1] %vm296_vm3, %v293_v49 }
 0x2a8   :  { %302 = vsyncpa [#allocation3], 1 }

// kernel: neural_af_forward.3
= control target key start
LH: loop header
LB: loop body
LE: loop exit
PB: predicated region body
PF: predicated region fallthrough
CT: control target
= control target key end

     0   :  { %v241_v0 = vmov 0   ;;  %v242_v2 = vmov 0.0|0.0   ;;  %v243_v11 = vmov 1   ;;  %vm244_vm0 = vmmov 0   ;;  %s330_s0 = inlined_call_operand.vmem [shape: f32[2,2], index: 0, kind: input, shape index: {}]   ;;  %s331_s1 = inlined_call_operand.vmem [shape: f32[336,128], index: 1, kind: input, shape index: {}]   ;;  %s332_s2 = inlined_call_operand.vmem [shape: f32[2,1], index: 2, kind: output, shape index: {}]  }
   0x1   :  { %239 = vset.pattern.permute.xlu0 %v241_v0  ;;  %v11_v1 = vld [vmem:[%s330_s0] sm:$0x3]  ;;  %210 = vmatprep.subr.bf16.mxu0 %v242_v2  ;;  %v40_v3 = vld [vmem:[%s331_s1 + $0xb8] sm:$0xff]  ;;  %v42_v6 = vld [vmem:[%s331_s1 + $0xc8] sm:$0xff]  ;;  %v245_v15 = vmov 0.0   ;;  %v19_v29 = vlaneseq  ;;  %vm139_vm1 = vcmask 1041408  }
   0x2   :  { %v41_v4 = vld [vmem:[%s331_s1 + $0xc0] sm:$0xff]  ;;  %16 = vperm.xlu0 %239, %v11_v1   ;;  %v43_v7 = vld [vmem:[%s331_s1 + $0xd0] sm:$0xff]  ;;  %v44_v9 = vld [vmem:[%s331_s1 + $0xd8] sm:$0xff]  ;;  %207 = vmatprep.mubr.msk.f32.mxu0 %vm244_vm0, %v245_v15  ;;  %vm148_vm2 = vcmask 1024  }
   0x3   :  { %v211_v5 = vpack.c.bf16 %v41_v4, %v40_v3  ;;  %v214_v8 = vpack.c.bf16 %v43_v7, %v42_v6  ;;  %v45_v10 = vld [vmem:[%s331_s1 + $0xe0] sm:$0xff]  ;;  %v46_v13 = vld [vmem:[%s331_s1 + $0xe8] sm:$0xff]  ;;  %v47_v14 = vld [vmem:[%s331_s1 + $0xf0] sm:$0xff]  ;;  %v20_v30 = vshrl.u32 %v19_v29, 7 }
   0x4   :  { %v217_v12 = vpack.c.bf16 %v45_v10, %v44_v9  ;;  %v220_v16 = vpack.c.bf16 %v47_v14, %v46_v13  ;;  %v48_v17 = vld [vmem:[%s331_s1 + $0xf8] sm:$0xff]  ;;  %v49_v18 = vld [vmem:[%s331_s1 + $0x100] sm:$0xff]  ;;  %v50_v20 = vld [vmem:[%s331_s1 + $0x108] sm:$0xff] }
   0x5   :  { %212 = vmatpush3.bf16.msra.mxu0 %v211_v5  ;;  %v223_v19 = vpack.c.bf16 %v49_v18, %v48_v17  ;;  %v51_v21 = vld [vmem:[%s331_s1 + $0x110] sm:$0xff]  ;;  %v52_v23 = vld [vmem:[%s331_s1 + $0x118] sm:$0xff]  ;;  %v53_v24 = vld [vmem:[%s331_s1 + $0x120] sm:$0xff]  ;;  %v21_v31 = vsub.s32 0, %v20_v30  ;;  %v30_v32 = vsub.s32 1, %v20_v30 }
   0x6   :  { %213 = vmatprep.subr.bf16.mxu0 %v242_v2  ;;  %240 = vset.pattern.permute.xlu0 %v243_v11  ;;  %v226_v22 = vpack.c.bf16 %v51_v21, %v50_v20  ;;  %v229_v25 = vpack.c.bf16 %v53_v24, %v52_v23  ;;  %v54_v26 = vld [vmem:[%s331_s1 + $0x128] sm:$0xff]  ;;  %v55_v27 = vld [vmem:[%s331_s1 + $0x130] sm:$0xff]  ;;  %v155_v44 = vld [vmem:[%s331_s1 + $0x138] ss:$0 sm:$0xff] }
   0x7   :  { %25 = vperm.xlu0 %240, %v11_v1   ;;  %v232_v28 = vpack.c.bf16 %v55_v27, %v54_v26  ;;  %v12_v33 = vld [vmem:[%s331_s1 + $0xa8] sm:$0x3]  ;;  %v154_v40 = vld [vmem:[%s331_s1 + $0xb0] ss:$0 sm:$0xff]  ;;  %v156_v48 = vld [vmem:[%s331_s1 + $0x140] ss:$0 sm:$0xff] }
   0x8   :  { %v22_v35 = vrot.slane %v12_v33, %v21_v31  ;;  %v31_v36 = vrot.slane %v12_v33, %v30_v32  ;;  %v157_v52 = vld [vmem:[%s331_s1 + $0x148] ss:$0 sm:$0xff] }
   0x9   :  { %215 = vmatpush3.bf16.msra.mxu0 %v214_v8 }
   0xa   :  { %216 = vmatprep.subr.bf16.mxu0 %v242_v2 }
   0xd   :  { %218 = vmatpush3.bf16.msra.mxu0 %v217_v12 }
   0xe   :  { %219 = vmatprep.subr.bf16.mxu0 %v242_v2 }
  0x11   :  { %221 = vmatpush3.bf16.msra.mxu0 %v220_v16 }
  0x12   :  { %222 = vmatprep.subr.bf16.mxu0 %v242_v2 }
  0x15   :  { %224 = vmatpush3.bf16.msra.mxu0 %v223_v19 }
  0x16   :  { %225 = vmatprep.subr.bf16.mxu0 %v242_v2 }
  0x19   :  { %227 = vmatpush3.bf16.msra.mxu0 %v226_v22 }
  0x1a   :  { %228 = vmatprep.subr.bf16.mxu0 %v242_v2 }
  0x1d   :  { %230 = vmatpush3.bf16.msra.mxu0 %v229_v25 }
  0x1e   :  { %231 = vmatprep.subr.bf16.mxu0 %v242_v2 }
  0x21   :  { %233 = vmatpush3.bf16.msra.mxu0 %v232_v28 }
  0x81   :  { %v17_v34 = vpop.permute.xlu0 %16 }
  0x82   :  { %v23_v38 = vmul.f32 %v22_v35, %v17_v34 }
  0x86   :  { %v26_v37 = vpop.permute.xlu0 %25 }
  0x87   :  { %v32_v39 = vmul.f32 %v31_v36, %v26_v37 }
  0x89   :  { %v33_v41 = vadd.f32 %v32_v39, %v23_v38 }
  0x8b   :  { %v38_v42 = vadd.f32 %v154_v40, %v33_v41 }
  0x8d   :  { %v39_v43 = vmax.f32 %v38_v42, 0.0 }
  0x8f   :  { %208 = vmatmul.mubr.f32.vlgmr.msra.gmra.mrb[0].mxu0 %v39_v43 }
 0x162   :  { %v127_v45 = vpop.f32.mrb[0].mxu0 }
 0x163   :  { %v128_v46 = vadd.f32 %v155_v44, %v127_v45  ;;  %v209_v47 = vpop.f32.mrb[1].mxu0 }
 0x165   :  { %v131_v49 = vmax.f32 %v128_v46, 0.0 }
 0x167   :  { %v138_v50 = vmul.f32 %v156_v48, %v131_v49 }
 0x169   :  { %v140_v51 = vsel %vm139_vm1, %v138_v50, 0.0 }
 0x16a   :  { %141 = vadd.xlane.f32.xlu1 %v140_v51 }
 0x1f7   :  { %v142_v53 = vpop.xlane.xlu1 %141 }
 0x1f8   :  { %v147_v54 = vadd.f32 %v157_v52, %v142_v53 }
 0x1fa   :  { %149 = vst.msk [vmem:[%s332_s2] sm:$0x3] %vm148_vm2, %v147_v54 }

</bundles_post_ra>
